<compile_context>
chip_gen: v7x
topology: tpu7x:2x2x1
jax: 0.10.0
libtpu: 0.0.40
codegen_flags: <defaults>
</compile_context>

<pallas_src>
import functools

import jax
import jax.numpy as jnp
from jax.experimental import pallas as pl
from jax.experimental.pallas import tpu as pltpu


def _round_up(a: int, b: int) -> int:
    return (a + b - 1) // b * b


def _residual_kernel(x_ref, w0_ref, b0_ref, w1_ref, b1_ref, g_ref, beta_ref,
                     o_ref, *, n_valid: int):
    x32 = x_ref[...].astype(jnp.float32)            # (TM, n_in_p) f32 residual path
    xb = x32.astype(jnp.bfloat16)                    # bf16 feed for the MXU

    # ff0: x @ W0^T + b0  (bf16 MXU inputs, f32 accumulation), then ReLU.
    h = jnp.dot(xb, w0_ref[...], preferred_element_type=jnp.float32)
    h = jnp.maximum(h + b0_ref[...], 0.0)
    # TODO(synk): dropout is identity at inference (eval mode); training would
    # need pltpu.prng_seed/prng_random_bits and a keep/scale mask here.

    # ff1: h @ W1^T + b1
    y = jnp.dot(h.astype(jnp.bfloat16), w1_ref[...],
                preferred_element_type=jnp.float32) + b1_ref[...]

    # Residual + LayerNorm over the valid n_in features (f32 statistics).
    r = x32 + y                                      # padding lanes are exactly 0
    n_in_p = r.shape[-1]
    inv_n = jnp.float32(1.0 / n_valid)
    mean = jnp.sum(r, axis=-1, keepdims=True) * inv_n
    cent = r - mean
    if n_valid != n_in_p:                            # mask padding lanes for var
        lane = jax.lax.broadcasted_iota(jnp.int32, r.shape, dimension=1)
        cent = jnp.where(lane < n_valid, cent, 0.0)
    var = jnp.sum(cent * cent, axis=-1, keepdims=True) * inv_n
    norm = cent * jax.lax.rsqrt(var + 1e-5)
    o_ref[...] = (norm * g_ref[...] + beta_ref[...]).astype(o_ref.dtype)


def residual_layer(x, w0_t, b0, w1_t, b1, gamma, beta):
    """x: (..., n_in). Params (weights stored transposed):
       w0_t: (n_in, n_hidden), b0: (n_hidden,)
       w1_t: (n_hidden, n_in), b1: (n_in,)
       gamma, beta: (n_in,)"""
    n_in = x.shape[-1]
    n_hidden = w0_t.shape[-1]

    x2d = x.reshape(-1, n_in)
    M = x2d.shape[0]
    x_bytes = jnp.dtype(x.dtype).itemsize

    # Lane-pad feature dims to multiples of 128 (lane-dense VPU/MXU/stores).
    n_in_p = _round_up(n_in, 128)
    n_h_p = _round_up(n_hidden, 128)

    # Row tile: ~2 MiB of f32 activations per grid step, multiple of 8 sublanes.
    TM = max(8, min(4096, (2 << 20) // (n_in_p * 4)))
    TM = _round_up(TM, 8)
    TM = min(TM, _round_up(M, 8))
    M_pad = _round_up(M, TM)
    grid_m = M_pad // TM

    # x stays in its original dtype (read once); bf16 cast happens in-kernel.
    xp = x2d
    if M_pad != M or n_in_p != n_in:
        xp = jnp.pad(xp, ((0, M_pad - M), (0, n_in_p - n_in)))

    # Weights cast to bf16 once (tiny, VMEM-resident across the row loop).
    w0b = w0_t.astype(jnp.bfloat16)
    w1b = w1_t.astype(jnp.bfloat16)
    if n_in_p != n_in or n_h_p != n_hidden:
        w0b = jnp.pad(w0b, ((0, n_in_p - n_in), (0, n_h_p - n_hidden)))
        w1b = jnp.pad(w1b, ((0, n_h_p - n_hidden), (0, n_in_p - n_in)))

    def _row(v, width):
        v = v.astype(jnp.float32)
        if width != v.shape[0]:
            v = jnp.pad(v, (0, width - v.shape[0]))
        return v.reshape(1, width)

    b0_2d = _row(b0, n_h_p)
    b1_2d = _row(b1, n_in_p)
    g_2d = _row(gamma, n_in_p)
    be_2d = _row(beta, n_in_p)

    # VMEM budget from tile math (double-buffered in/out + intermediates).
    vmem_bytes = (
        2 * 2 * (n_in_p * n_h_p + n_h_p * n_in_p)     # two bf16 weights x2 bufs
        + 2 * 4 * (n_h_p + 3 * n_in_p)                # biases / gamma / beta (f32)
        + 2 * TM * n_in_p * x_bytes                   # x tile x2 bufs
        + 2 * TM * n_in_p * x_bytes                   # out tile x2 bufs
        + TM * n_h_p * 4 + TM * n_in_p * 16           # in-kernel intermediates
    )
    vmem_limit = int(min(max(2 * vmem_bytes, 16 << 20), 48 << 20))

    cost = pl.CostEstimate(
        flops=4 * M_pad * n_in_p * n_h_p,
        transcendentals=M_pad,
        bytes_accessed=(2 * M_pad * n_in_p * x_bytes          # x read + out write
                        + (w0b.size + w1b.size) * 2
                        + (b0_2d.size + b1_2d.size + g_2d.size + be_2d.size) * 4),
    )

    resident = lambda shape: pl.BlockSpec(shape, lambda i: (0, 0))

    out = pl.pallas_call(
        functools.partial(_residual_kernel, n_valid=n_in),
        out_shape=jax.ShapeDtypeStruct((M_pad, n_in_p), x.dtype),
        grid=(grid_m,),
        in_specs=[
            pl.BlockSpec((TM, n_in_p), lambda i: (i, 0)),   # x: tiled over rows
            resident((n_in_p, n_h_p)),                      # W0^T (resident)
            resident((1, n_h_p)),                           # b0
            resident((n_h_p, n_in_p)),                      # W1^T (resident)
            resident((1, n_in_p)),                          # b1
            resident((1, n_in_p)),                          # gamma
            resident((1, n_in_p)),                          # beta
        ],
        out_specs=pl.BlockSpec((TM, n_in_p), lambda i: (i, 0)),
        compiler_params=pltpu.CompilerParams(
            dimension_semantics=("parallel",),
            vmem_limit_bytes=vmem_limit,
        ),
        cost_estimate=cost,
    )(xp, w0b, b0_2d, w1b, b1_2d, g_2d, be_2d)

    return out[:M, :n_in].reshape(x.shape)


def _xavier_uniform(key, fan_in, fan_out, gain):
    # matches torch.nn.init.xavier_uniform_ on a (fan_out, fan_in) weight;
    # built directly in transposed (fan_in, fan_out) layout.
    bound = gain * jnp.sqrt(6.0 / (fan_in + fan_out))
    return jax.random.uniform(key, (fan_in, fan_out), jnp.float32, -bound, bound)


def init_params(key, n_in, n_hidden):
    k0, k1, kb0, kb1 = jax.random.split(key, 4)
    w0_t = _xavier_uniform(k0, n_in, n_hidden, gain=0.25)   # ff0 weight^T
    w1_t = _xavier_uniform(k1, n_hidden, n_in, gain=0.25)   # ff1 weight^T
    # PyTorch Linear default bias init: U(-1/sqrt(fan_in), 1/sqrt(fan_in))
    b0 = jax.random.uniform(kb0, (n_hidden,), jnp.float32,
                            -1.0 / jnp.sqrt(n_in), 1.0 / jnp.sqrt(n_in))
    b1 = jax.random.uniform(kb1, (n_in,), jnp.float32,
                            -1.0 / jnp.sqrt(n_hidden), 1.0 / jnp.sqrt(n_hidden))
    gamma = jnp.ones((n_in,), jnp.float32)   # LayerNorm weight
    beta = jnp.zeros((n_in,), jnp.float32)   # LayerNorm bias
    return w0_t, b0, w1_t, b1, gamma, beta


if __name__ == "__main__":
    key = jax.random.PRNGKey(0)
    batch, seq, n_in, n_hidden = 2, 8, 32, 64

    kx, kp = jax.random.split(key)
    x = jax.random.normal(kx, (batch, seq, n_in), jnp.float32)
    params = init_params(kp, n_in, n_hidden)

    out = jax.jit(residual_layer)(x, *params)
    jax.block_until_ready(out)

    # Sanity check vs a pure-JAX reference mirroring the kernel's numerics
    # (bf16 matmul inputs, f32 accumulation; f32 residual + LayerNorm stats).
    w0_t, b0, w1_t, b1, gamma, beta = params
    x2d = x.reshape(-1, n_in)
    h = jnp.maximum(
        jnp.dot(x2d.astype(jnp.bfloat16), w0_t.astype(jnp.bfloat16),
                preferred_element_type=jnp.float32) + b0, 0.0)
    y = jnp.dot(h.astype(jnp.bfloat16), w1_t.astype(jnp.bfloat16),
                preferred_element_type=jnp.float32) + b1
    r = x2d + y
    mu = r.mean(-1, keepdims=True)
    var = ((r - mu) ** 2).mean(-1, keepdims=True)
    ref = ((r - mu) / jnp.sqrt(var + 1e-5) * gamma + beta).reshape(x.shape)
    assert jnp.allclose(out, ref, atol=2e-2, rtol=2e-2), "mismatch vs reference"

    print("KERNEL_OK")
</pallas_src>

<mosaic_0001>
module attributes {stable_mosaic.version = 11 : i64} {
  func.func @_residual_kernel(%arg0: i32, %arg1: memref<16x128xf32, #tpu.memory_space<vmem>>, %arg2: memref<128x128xbf16, #tpu.memory_space<vmem>>, %arg3: memref<1x128xf32, #tpu.memory_space<vmem>>, %arg4: memref<128x128xbf16, #tpu.memory_space<vmem>>, %arg5: memref<1x128xf32, #tpu.memory_space<vmem>>, %arg6: memref<1x128xf32, #tpu.memory_space<vmem>>, %arg7: memref<1x128xf32, #tpu.memory_space<vmem>>, %arg8: memref<16x128xf32, #tpu.memory_space<vmem>>) attributes {dimension_semantics = [#tpu.dimension_semantics<parallel>], iteration_bounds = array<i64: 1>, scalar_prefetch = 0 : i64, scratch_operands = 0 : i64, tpu.core_type = #tpu.core_type<tc>, window_params = [{transform_indices = @transform_0, window_bounds = array<i64: 16, 128>}, {pipeline_mode = #tpu.pipeline_mode<synchronous>, transform_indices = @transform_1, window_bounds = array<i64: 128, 128>}, {pipeline_mode = #tpu.pipeline_mode<synchronous>, transform_indices = @transform_2, window_bounds = array<i64: 1, 128>}, {pipeline_mode = #tpu.pipeline_mode<synchronous>, transform_indices = @transform_3, window_bounds = array<i64: 128, 128>}, {pipeline_mode = #tpu.pipeline_mode<synchronous>, transform_indices = @transform_4, window_bounds = array<i64: 1, 128>}, {pipeline_mode = #tpu.pipeline_mode<synchronous>, transform_indices = @transform_5, window_bounds = array<i64: 1, 128>}, {pipeline_mode = #tpu.pipeline_mode<synchronous>, transform_indices = @transform_6, window_bounds = array<i64: 1, 128>}, {transform_indices = @transform_7, window_bounds = array<i64: 16, 128>}]} {
    %c0 = arith.constant 0 : index
    %c0_0 = arith.constant 0 : index
    %0 = vector.load %arg1[%c0, %c0_0] : memref<16x128xf32, #tpu.memory_space<vmem>>, vector<16x128xf32>
    %1 = arith.truncf %0 : vector<16x128xf32> to vector<16x128xbf16>
    %c0_1 = arith.constant 0 : index
    %c0_2 = arith.constant 0 : index
    %2 = vector.load %arg2[%c0_1, %c0_2] : memref<128x128xbf16, #tpu.memory_space<vmem>>, vector<128x128xbf16>
    %cst = arith.constant dense<0.000000e+00> : vector<16x128xf32>
    %3 = tpu.matmul %1, %2, %cst {dimension_numbers = #tpu.dot_dimension_numbers<[1], [0], [0], [1], [0, 0, 1, 1], [], []>} : vector<16x128xbf16>, vector<128x128xbf16>, vector<16x128xf32> -> vector<16x128xf32>
    %c0_3 = arith.constant 0 : index
    %c0_4 = arith.constant 0 : index
    %4 = vector.load %arg3[%c0_3, %c0_4] : memref<1x128xf32, #tpu.memory_space<vmem>>, vector<1x128xf32>
    %5 = vector.broadcast %4 : vector<1x128xf32> to vector<16x128xf32>
    %6 = arith.addf %3, %5 : vector<16x128xf32>
    %cst_5 = arith.constant 0.000000e+00 : f32
    %7 = vector.broadcast %cst_5 : f32 to vector<16x128xf32>
    %8 = arith.maximumf %6, %7 : vector<16x128xf32>
    %9 = arith.truncf %8 : vector<16x128xf32> to vector<16x128xbf16>
    %c0_6 = arith.constant 0 : index
    %c0_7 = arith.constant 0 : index
    %10 = vector.load %arg4[%c0_6, %c0_7] : memref<128x128xbf16, #tpu.memory_space<vmem>>, vector<128x128xbf16>
    %cst_8 = arith.constant dense<0.000000e+00> : vector<16x128xf32>
    %11 = tpu.matmul %9, %10, %cst_8 {dimension_numbers = #tpu.dot_dimension_numbers<[1], [0], [0], [1], [0, 0, 1, 1], [], []>} : vector<16x128xbf16>, vector<128x128xbf16>, vector<16x128xf32> -> vector<16x128xf32>
    %c0_9 = arith.constant 0 : index
    %c0_10 = arith.constant 0 : index
    %12 = vector.load %arg5[%c0_9, %c0_10] : memref<1x128xf32, #tpu.memory_space<vmem>>, vector<1x128xf32>
    %13 = vector.broadcast %12 : vector<1x128xf32> to vector<16x128xf32>
    %14 = arith.addf %11, %13 : vector<16x128xf32>
    %15 = arith.addf %0, %14 : vector<16x128xf32>
    %cst_11 = arith.constant dense<0.000000e+00> : vector<16xf32>
    %16 = vector.multi_reduction <add>, %15, %cst_11 [1] : vector<16x128xf32> to vector<16xf32>
    %17 = vector.shape_cast %16 : vector<16xf32> to vector<16x1xf32>
    %cst_12 = arith.constant 3.125000e-02 : f32
    %18 = vector.broadcast %cst_12 : f32 to vector<16x1xf32>
    %19 = arith.mulf %17, %18 : vector<16x1xf32>
    %20 = vector.broadcast %19 : vector<16x1xf32> to vector<16x128xf32>
    %21 = arith.subf %15, %20 : vector<16x128xf32>
    %22 = tpu.iota {dimensions = array<i32: 1>} : vector<16x128xi32>
    %c32_i32 = arith.constant 32 : i32
    %23 = vector.broadcast %c32_i32 : i32 to vector<16x128xi32>
    %24 = arith.cmpi slt, %22, %23 : vector<16x128xi32>
    %cst_13 = arith.constant 0.000000e+00 : f32
    %25 = vector.broadcast %cst_13 : f32 to vector<16x128xf32>
    %26 = arith.select %24, %21, %25 : vector<16x128xi1>, vector<16x128xf32>
    %27 = arith.mulf %26, %26 : vector<16x128xf32>
    %cst_14 = arith.constant dense<0.000000e+00> : vector<16xf32>
    %28 = vector.multi_reduction <add>, %27, %cst_14 [1] : vector<16x128xf32> to vector<16xf32>
    %29 = vector.shape_cast %28 : vector<16xf32> to vector<16x1xf32>
    %cst_15 = arith.constant 3.125000e-02 : f32
    %30 = vector.broadcast %cst_15 : f32 to vector<16x1xf32>
    %31 = arith.mulf %29, %30 : vector<16x1xf32>
    %cst_16 = arith.constant 9.99999974E-6 : f32
    %32 = vector.broadcast %cst_16 : f32 to vector<16x1xf32>
    %33 = arith.addf %31, %32 : vector<16x1xf32>
    %34 = math.rsqrt %33 : vector<16x1xf32>
    %35 = vector.broadcast %34 : vector<16x1xf32> to vector<16x128xf32>
    %36 = arith.mulf %26, %35 : vector<16x128xf32>
    %c0_17 = arith.constant 0 : index
    %c0_18 = arith.constant 0 : index
    %37 = vector.load %arg6[%c0_17, %c0_18] : memref<1x128xf32, #tpu.memory_space<vmem>>, vector<1x128xf32>
    %38 = vector.broadcast %37 : vector<1x128xf32> to vector<16x128xf32>
    %39 = arith.mulf %36, %38 : vector<16x128xf32>
    %c0_19 = arith.constant 0 : index
    %c0_20 = arith.constant 0 : index
    %40 = vector.load %arg7[%c0_19, %c0_20] : memref<1x128xf32, #tpu.memory_space<vmem>>, vector<1x128xf32>
    %41 = vector.broadcast %40 : vector<1x128xf32> to vector<16x128xf32>
    %42 = arith.addf %39, %41 : vector<16x128xf32>
    %c0_21 = arith.constant 0 : index
    %c0_22 = arith.constant 0 : index
    %43 = vector.load %arg8[%c0_21, %c0_22] : memref<16x128xf32, #tpu.memory_space<vmem>>, vector<16x128xf32>
    tpu.vector_store %arg8[%c0_21, %c0_22], %42 {strides = array<i32>} : memref<16x128xf32, #tpu.memory_space<vmem>>, vector<16x128xf32>,
    return
  }
  func.func @transform_0(%arg0: i32) -> (i32, i32) {
    %c0_i32 = arith.constant 0 : i32
    %c0_i32_0 = arith.constant 0 : i32
    return %arg0, %c0_i32 : i32, i32
  }
  func.func @transform_1(%arg0: i32) -> (i32, i32) {
    %c0_i32 = arith.constant 0 : i32
    %c0_i32_0 = arith.constant 0 : i32
    %c0_i32_1 = arith.constant 0 : i32
    return %c0_i32, %c0_i32_0 : i32, i32
  }
  func.func @transform_2(%arg0: i32) -> (i32, i32) {
    %c0_i32 = arith.constant 0 : i32
    %c0_i32_0 = arith.constant 0 : i32
    %c0_i32_1 = arith.constant 0 : i32
    return %c0_i32, %c0_i32_0 : i32, i32
  }
  func.func @transform_3(%arg0: i32) -> (i32, i32) {
    %c0_i32 = arith.constant 0 : i32
    %c0_i32_0 = arith.constant 0 : i32
    %c0_i32_1 = arith.constant 0 : i32
    return %c0_i32, %c0_i32_0 : i32, i32
  }
  func.func @transform_4(%arg0: i32) -> (i32, i32) {
    %c0_i32 = arith.constant 0 : i32
    %c0_i32_0 = arith.constant 0 : i32
    %c0_i32_1 = arith.constant 0 : i32
    return %c0_i32, %c0_i32_0 : i32, i32
  }
  func.func @transform_5(%arg0: i32) -> (i32, i32) {
    %c0_i32 = arith.constant 0 : i32
    %c0_i32_0 = arith.constant 0 : i32
    %c0_i32_1 = arith.constant 0 : i32
    return %c0_i32, %c0_i32_0 : i32, i32
  }
  func.func @transform_6(%arg0: i32) -> (i32, i32) {
    %c0_i32 = arith.constant 0 : i32
    %c0_i32_0 = arith.constant 0 : i32
    %c0_i32_1 = arith.constant 0 : i32
    return %c0_i32, %c0_i32_0 : i32, i32
  }
  func.func @transform_7(%arg0: i32) -> (i32, i32) {
    %c0_i32 = arith.constant 0 : i32
    %c0_i32_0 = arith.constant 0 : i32
    return %arg0, %c0_i32 : i32, i32
  }
}

</mosaic_0001>

<bundles_post_ra>
// kernel: residual_layer.1
= control target key start
LH: loop header
LB: loop body
LE: loop exit
PB: predicated region body
PF: predicated region fallthrough
CT: control target
= control target key end

     0   :  { %v410_v0 = vmov 0.0   ;;  %vm411_vm0 = vmmov 0   ;;  %v267_v39 = vlaneseq  ;;  %s524_s1 = inlined_call_operand.vmem [shape: bf16[128,128], index: 1, kind: input, shape index: {}]   ;;  %s525_s3 = inlined_call_operand.vmem [shape: bf16[128,128], index: 3, kind: input, shape index: {}]   ;;  %s526_s0 = inlined_call_operand.vmem [shape: f32[16,128], index: 0, kind: input, shape index: {}]   ;;  %s527_s2 = inlined_call_operand.vmem [shape: f32[1,128], index: 2, kind: input, shape index: {}]   ;;  %s528_s4 = inlined_call_operand.vmem [shape: f32[1,128], index: 4, kind: input, shape index: {}]   ;;  %s529_s5 = inlined_call_operand.vmem [shape: f32[1,128], index: 5, kind: input, shape index: {}]   ;;  %s530_s6 = inlined_call_operand.vmem [shape: f32[1,128], index: 6, kind: input, shape index: {}]   ;;  %s531_s7 = inlined_call_operand.vmem [shape: f32[16,128], index: 7, kind: output, shape index: {}]  }
   0x1   :  { %348 = vmatprep.subr.bf16.mxu0 %v410_v0  ;;  %v390_v1 = vld [vmem:[%s524_s1] sm:$0xff]   ;;  %364 = vmatprep.mubr.msk.bf16.mxu0 %vm411_vm0, %v410_v0  ;;  %v391_v2 = vld [vmem:[%s524_s1 + $0x8] sm:$0xff]   ;;  %v392_v3 = vld [vmem:[%s524_s1 + $0x10] sm:$0xff]  }
   0x2   :  { %368 = vmatprep.subr.bf16.mxu1 %v410_v0  ;;  %384 = vmatprep.mubr.msk.bf16.mxu1 %vm411_vm0, %v410_v0  ;;  %v398_v4 = vld [vmem:[%s525_s3] sm:$0xff]   ;;  %v393_v5 = vld [vmem:[%s524_s1 + $0x18] sm:$0xff]   ;;  %v399_v6 = vld [vmem:[%s525_s3 + $0x8] sm:$0xff]   ;;  %v268_v40 = vand.u32 127, %v267_v39 }
   0x3   :  { %349 = vmatpush3.bf16.msra.mxu0 %v390_v1  ;;  %369 = vmatpush3.bf16.msra.mxu1 %v398_v4  ;;  %v394_v7 = vld [vmem:[%s524_s1 + $0x20] sm:$0xff]   ;;  %v400_v8 = vld [vmem:[%s525_s3 + $0x10] sm:$0xff]   ;;  %v395_v9 = vld [vmem:[%s524_s1 + $0x28] sm:$0xff]  }
   0x4   :  { %350 = vmatprep.subr.bf16.mxu0 %v410_v0  ;;  %370 = vmatprep.subr.bf16.mxu1 %v410_v0  ;;  %v401_v10 = vld [vmem:[%s525_s3 + $0x18] sm:$0xff]   ;;  %v396_v11 = vld [vmem:[%s524_s1 + $0x30] sm:$0xff]   ;;  %v402_v12 = vld [vmem:[%s525_s3 + $0x20] sm:$0xff]   ;;  %vm269_vm1 = vcmp.lt.s32.totalorder %v268_v40, 32 }
   0x5   :  { %v397_v13 = vld [vmem:[%s524_s1 + $0x38] sm:$0xff]   ;;  %v27_v14 = vld [vmem:[%s526_s0] sm:$0xff]  ;;  %v28_v15 = vld [vmem:[%s526_s0 + $0x8] sm:$0xff] }
   0x6   :  { %v403_v16 = vld [vmem:[%s525_s3 + $0x28] sm:$0xff]   ;;  %v29_v17 = vpack.c.bf16 %v28_v15, %v27_v14  ;;  %v404_v18 = vld [vmem:[%s525_s3 + $0x30] sm:$0xff]   ;;  %v405_v19 = vld [vmem:[%s525_s3 + $0x38] sm:$0xff]  }
   0x7   :  { %351 = vmatpush3.bf16.msra.mxu0 %v391_v2  ;;  %371 = vmatpush3.bf16.msra.mxu1 %v399_v6  ;;  %v310_v20 = vld [vmem:[%s527_s2] ss:$0 sm:$0xff] }
   0x8   :  { %352 = vmatprep.subr.bf16.mxu0 %v410_v0  ;;  %372 = vmatprep.subr.bf16.mxu1 %v410_v0  ;;  %v319_v30 = vld [vmem:[%s528_s4] ss:$0 sm:$0xff] }
   0x9   :  { %v328_v58 = vld [vmem:[%s529_s5] ss:$0 sm:$0xff] }
   0xa   :  { %v329_v60 = vld [vmem:[%s530_s6] ss:$0 sm:$0xff] }
   0xb   :  { %353 = vmatpush3.bf16.msra.mxu0 %v392_v3  ;;  %373 = vmatpush3.bf16.msra.mxu1 %v400_v8 }
   0xc   :  { %354 = vmatprep.subr.bf16.mxu0 %v410_v0  ;;  %374 = vmatprep.subr.bf16.mxu1 %v410_v0 }
   0xf   :  { %355 = vmatpush3.bf16.msra.mxu0 %v393_v5  ;;  %375 = vmatpush3.bf16.msra.mxu1 %v401_v10 }
  0x10   :  { %356 = vmatprep.subr.bf16.mxu0 %v410_v0  ;;  %376 = vmatprep.subr.bf16.mxu1 %v410_v0 }
  0x13   :  { %357 = vmatpush3.bf16.msra.mxu0 %v394_v7  ;;  %377 = vmatpush3.bf16.msra.mxu1 %v402_v12 }
  0x14   :  { %358 = vmatprep.subr.bf16.mxu0 %v410_v0  ;;  %378 = vmatprep.subr.bf16.mxu1 %v410_v0 }
  0x17   :  { %359 = vmatpush3.bf16.msra.mxu0 %v395_v9  ;;  %379 = vmatpush3.bf16.msra.mxu1 %v403_v16 }
  0x18   :  { %360 = vmatprep.subr.bf16.mxu0 %v410_v0  ;;  %380 = vmatprep.subr.bf16.mxu1 %v410_v0 }
  0x1b   :  { %361 = vmatpush3.bf16.msra.mxu0 %v396_v11  ;;  %381 = vmatpush3.bf16.msra.mxu1 %v404_v18 }
  0x1c   :  { %362 = vmatprep.subr.bf16.mxu0 %v410_v0  ;;  %382 = vmatprep.subr.bf16.mxu1 %v410_v0 }
  0x1f   :  { %363 = vmatpush3.bf16.msra.mxu0 %v397_v13  ;;  %383 = vmatpush3.bf16.msra.mxu1 %v405_v19 }
  0x22   :  { %365 = vmatmul.mubr.bf16.vlgmr.msra.gmra.mrb[0].mxu0 %v29_v17 }
  0xf5   :  { %v135_v21 = vpop.f32.mrb[0].mxu0 }
  0xf6   :  { %v136_v22 = vadd.f32 %v310_v20, %v135_v21  ;;  %v366_v23 = vpop.f32.mrb[1].mxu0 }
  0xf7   :  { %v138_v24 = vpop.f32.mrb[2].mxu0 }
  0xf8   :  { %v139_v25 = vadd.f32 %v310_v20, %v138_v24  ;;  %v367_v26 = vpop.f32.mrb[3].mxu0  ;;  %v142_v27 = vmax.f32 %v136_v22, 0.0 }
  0xfa   :  { %v143_v28 = vmax.f32 %v139_v25, 0.0 }
  0xfc   :  { %v144_v29 = vpack.c.bf16 %v143_v28, %v142_v27 }
  0xfe   :  { %385 = vmatmul.mubr.bf16.vlgmr.msra.gmra.mrb[0].mxu1 %v144_v29 }
 0x1d1   :  { %v250_v31 = vpop.f32.mrb[0].mxu1 }
 0x1d2   :  { %v251_v32 = vadd.f32 %v319_v30, %v250_v31  ;;  %v386_v33 = vpop.f32.mrb[1].mxu1 }
 0x1d3   :  { %v253_v34 = vpop.f32.mrb[2].mxu1 }
 0x1d4   :  { %v254_v35 = vadd.f32 %v319_v30, %v253_v34  ;;  %v387_v36 = vpop.f32.mrb[3].mxu1  ;;  %v257_v37 = vadd.f32 %v251_v32, %v27_v14 }
 0x1d6   :  { %259 = vadd.xlane.f32.xlu0 %v257_v37  ;;  %v258_v38 = vadd.f32 %v254_v35, %v28_v15 }
 0x1da   :  { %261 = vadd.xlane.f32.xlu0 %v258_v38 }
 0x263   :  { %v260_v41 = vpop.xlane.xlu0 %259 }
 0x264   :  { %v263_v42 = vmul.f32 0.03125, %v260_v41 }
 0x266   :  { %v265_v43 = vsub.f32 %v257_v37, %v263_v42 }
 0x267   :  { %v262_v44 = vpop.xlane.xlu0 %261 }
 0x268   :  { %v264_v45 = vmul.f32 0.03125, %v262_v44  ;;  %v270_v46 = vsel %vm269_vm1, %v265_v43, 0.0 }
 0x269   :  { %v272_v47 = vmul.f32 %v270_v46, %v270_v46 }
 0x26a   :  { %v266_v48 = vsub.f32 %v258_v38, %v264_v45 }
 0x26b   :  { %274 = vadd.xlane.f32.xlu1 %v272_v47 }
 0x26c   :  { %v271_v49 = vsel %vm269_vm1, %v266_v48, 0.0 }
 0x26d   :  { %v273_v50 = vmul.f32 %v271_v49, %v271_v49 }
 0x26f   :  { %276 = vadd.xlane.f32.xlu1 %v273_v50 }
 0x2f8   :  { %v275_v51 = vpop.xlane.xlu1 %274 }
 0x2f9   :  { %v278_v52 = vmul.f32 0.03125, %v275_v51 }
 0x2fb   :  { %v280_v53 = vadd.f32 1e-05, %v278_v52 }
 0x2fc   :  { %v277_v54 = vpop.xlane.xlu1 %276 }
 0x2fd   :  { %406 = vrsqrt.f32 %v280_v53  ;;  %v279_v55 = vmul.f32 0.03125, %v277_v54 }
 0x2ff   :  { %v281_v56 = vadd.f32 1e-05, %v279_v55 }
 0x301   :  { %408 = vrsqrt.f32 %v281_v56 }
 0x307   :  { %v407_v57 = vpop.eup %406 }
 0x308   :  { %v284_v59 = vmul.f32 %v407_v57, %v270_v46 }
 0x30a   :  { %v293_v61 = vmul.f32 %v328_v58, %v284_v59 }
 0x30b   :  { %v409_v62 = vpop.eup %408 }
 0x30c   :  { %v302_v63 = vadd.f32 %v329_v60, %v293_v61  ;;  %v285_v0 = vmul.f32 %v409_v62, %v271_v49 }
 0x30e   :  { %304 = vst [vmem:[%s531_s7] sm:$0xff] %v302_v63  ;;  %v294_v1 = vmul.f32 %v328_v58, %v285_v0 }
 0x310   :  { %v303_v2 = vadd.f32 %v329_v60, %v294_v1 }
 0x312   :  { %305 = vst [vmem:[%s531_s7 + $0x8] sm:$0xff] %v303_v2 }

</bundles_post_ra>
